<compile_context>
chip_gen: v7x
topology: tpu7x:2x2x1
jax: 0.10.0
libtpu: 0.0.40
codegen_flags: <defaults>
</compile_context>

<pallas_src>
import functools

import jax
import jax.numpy as jnp
from jax.experimental import pallas as pl
from jax.experimental.pallas import tpu as pltpu


def _lecun_act(x):
    # LeCun activation from the reference module: 1.7159 * tanh(0.666 * x)
    return 1.7159 * jnp.tanh(0.666 * x)


def cfc_kernel(inp_ref, hx_ref, ts_ref,
               w1i_ref, w1h_ref, b1_ref,
               w2_ref, b2_ref,
               wh_ref, bh_ref,
               out_ref, *, hidden_size, no_gate):
    # Backbone layer 1: split-K matmul (input part + hidden part), f32 accumulation.
    # Equivalent to cat([input, hx], 1) @ W1 without materializing the concat.
    h = jnp.dot(inp_ref[...], w1i_ref[...], preferred_element_type=jnp.float32)
    h = h + jnp.dot(hx_ref[...], w1h_ref[...], preferred_element_type=jnp.float32)
    h = _lecun_act(h + b1_ref[...])

    # Backbone layer 2 (Dropout == identity at inference).
    h = jnp.dot(h.astype(w2_ref.dtype), w2_ref[...],
                preferred_element_type=jnp.float32)
    h = _lecun_act(h + b2_ref[...])

    # Fused heads: one MXU pass producing [ff1 | ff2 | time_a | time_b].
    z = jnp.dot(h.astype(wh_ref.dtype), wh_ref[...],
                preferred_element_type=jnp.float32) + bh_ref[...]

    H = hidden_size
    # Slices are on 128-lane boundaries when H % 128 == 0 -> no VMEM copies.
    ff1 = jnp.tanh(z[:, 0 * H:1 * H])
    ff2 = jnp.tanh(z[:, 1 * H:2 * H])
    t_a = z[:, 2 * H:3 * H]
    t_b = z[:, 3 * H:4 * H]

    ts = ts_ref[...]                                 # (tb, 1), broadcasts over lanes
    t_interp = jax.nn.sigmoid(t_a * ts + t_b)        # f32 transcendentals (v5e-safe)
    if no_gate:
        new_hidden = ff1 + t_interp * ff2
    else:
        new_hidden = ff1 * (1.0 - t_interp) + t_interp * ff2
    out_ref[...] = new_hidden.astype(out_ref.dtype)


def _round_up(x, m):
    return ((x + m - 1) // m) * m


def cfc_forward(inp, hx, ts, params, *, no_gate=False,
                batch_tile=256, single_block_max=512):
    batch, input_size = inp.shape
    hidden_size = hx.shape[1]
    w1i, w1h, b1 = params["w1_in"], params["w1_h"], params["b1"]
    w2, b2 = params["w2"], params["b2"]
    wh, bh = params["wh"], params["bh"]
    bu = w1i.shape[1]

    # Tile plan:
    #  - small batch: one grid step, whole (padded) batch in a single block.
    #  - large batch: 256-row tiles (multiple of the bf16 16-row sublane pack,
    #    fills the v6e/v7x 256-wide MXU M-dim), batch axis marked "parallel".
    if batch <= single_block_max:
        tb = _round_up(batch, 16)          # bf16 sublane pack
        padded_batch = tb
    else:
        tb = batch_tile
        padded_batch = _round_up(batch, tb)
    grid = (padded_batch // tb,)

    # Matmul operands in bf16; accumulation happens in f32 inside the kernel.
    inp_b = inp.astype(jnp.bfloat16)
    hx_b = hx.astype(jnp.bfloat16)
    ts2d = ts.reshape(batch, 1).astype(jnp.float32)
    if padded_batch != batch:
        pad = padded_batch - batch
        inp_b = jnp.pad(inp_b, ((0, pad), (0, 0)))
        hx_b = jnp.pad(hx_b, ((0, pad), (0, 0)))
        ts2d = jnp.pad(ts2d, ((0, pad), (0, 0)))

    kernel = functools.partial(cfc_kernel, hidden_size=hidden_size, no_gate=no_gate)

    vmem = pltpu.MemorySpace.VMEM
    batched = lambda i: (i, 0)       # batch-tiled operands
    resident = lambda i: (0, 0)      # weights: constant index -> stay VMEM-resident

    out = pl.pallas_call(
        kernel,
        out_shape=jax.ShapeDtypeStruct((padded_batch, hidden_size), jnp.float32),
        grid=grid,
        in_specs=[
            pl.BlockSpec((tb, input_size), batched, memory_space=vmem),
            pl.BlockSpec((tb, hidden_size), batched, memory_space=vmem),
            pl.BlockSpec((tb, 1), batched, memory_space=vmem),
            pl.BlockSpec((input_size, bu), resident, memory_space=vmem),
            pl.BlockSpec((hidden_size, bu), resident, memory_space=vmem),
            pl.BlockSpec((1, bu), resident, memory_space=vmem),
            pl.BlockSpec((bu, bu), resident, memory_space=vmem),
            pl.BlockSpec((1, bu), resident, memory_space=vmem),
            pl.BlockSpec((bu, 4 * hidden_size), resident, memory_space=vmem),
            pl.BlockSpec((1, 4 * hidden_size), resident, memory_space=vmem),
        ],
        out_specs=pl.BlockSpec((tb, hidden_size), batched, memory_space=vmem),
        compiler_params=pltpu.CompilerParams(
            # With grid=(1,) there is nothing to shard; larger batches split the
            # batch axis across TensorCores (v7x megacore).
            dimension_semantics=("parallel",) if grid[0] > 1 else ("arbitrary",),
            vmem_limit_bytes=32 * 1024 * 1024,
        ),
    )(inp_b, hx_b, ts2d, w1i, w1h, b1, w2, b2, wh, bh)

    if padded_batch != batch:
        out = out[:batch]
    return out


def make_params(key, input_size, hidden_size, backbone_units, init_gain=1.0):
    """Deterministic synthetic init mirroring CfcCell.__init__ (+xavier_uniform)."""
    def xavier(k, shape):
        fan_in, fan_out = shape
        bound = init_gain * jnp.sqrt(6.0 / (fan_in + fan_out))
        return jax.random.uniform(k, shape, jnp.float32, -bound, bound)

    ks = jax.random.split(key, 12)
    in_dim = input_size + hidden_size
    # W1 is initialized over the full (in_dim, bu) fan (as in the PyTorch module)
    # and then split so the kernel can avoid the [input, hx] concat.
    w1 = xavier(ks[0], (in_dim, backbone_units))
    b1 = jax.random.uniform(ks[1], (1, backbone_units), jnp.float32, -0.1, 0.1)
    w2 = xavier(ks[2], (backbone_units, backbone_units))
    b2 = jax.random.uniform(ks[3], (1, backbone_units), jnp.float32, -0.1, 0.1)
    # Four head Linears (ff1, ff2, time_a, time_b) concatenated once so the
    # kernel runs a single (bu, 4*hid) matmul.
    w_ff1 = xavier(ks[4], (backbone_units, hidden_size))
    w_ff2 = xavier(ks[5], (backbone_units, hidden_size))
    w_ta = xavier(ks[6], (backbone_units, hidden_size))
    w_tb = xavier(ks[7], (backbone_units, hidden_size))
    b_ff1 = jax.random.uniform(ks[8], (1, hidden_size), jnp.float32, -0.1, 0.1)
    b_ff2 = jax.random.uniform(ks[9], (1, hidden_size), jnp.float32, -0.1, 0.1)
    b_ta = jax.random.uniform(ks[10], (1, hidden_size), jnp.float32, -0.1, 0.1)
    b_tb = jax.random.uniform(ks[11], (1, hidden_size), jnp.float32, -0.1, 0.1)
    wh = jnp.concatenate([w_ff1, w_ff2, w_ta, w_tb], axis=1)
    bh = jnp.concatenate([b_ff1, b_ff2, b_ta, b_tb], axis=1)
    return {
        "w1_in": w1[:input_size].astype(jnp.bfloat16),
        "w1_h": w1[input_size:].astype(jnp.bfloat16),
        "b1": b1,
        "w2": w2.astype(jnp.bfloat16), "b2": b2,
        "wh": wh.astype(jnp.bfloat16), "bh": bh,
    }


def cfc_reference(inp, hx, ts, params, hidden_size, no_gate=False):
    """Pure-JAX reference with the same bf16-weight / f32-accumulation numerics."""
    h = (jnp.dot(inp.astype(jnp.bfloat16), params["w1_in"],
                 preferred_element_type=jnp.float32)
         + jnp.dot(hx.astype(jnp.bfloat16), params["w1_h"],
                   preferred_element_type=jnp.float32)
         + params["b1"])
    h = _lecun_act(h)
    h = jnp.dot(h.astype(jnp.bfloat16), params["w2"],
                preferred_element_type=jnp.float32) + params["b2"]
    h = _lecun_act(h)
    z = jnp.dot(h.astype(jnp.bfloat16), params["wh"],
                preferred_element_type=jnp.float32) + params["bh"]
    H = hidden_size
    ff1 = jnp.tanh(z[:, :H])
    ff2 = jnp.tanh(z[:, H:2 * H])
    t_a = z[:, 2 * H:3 * H]
    t_b = z[:, 3 * H:4 * H]
    t_interp = jax.nn.sigmoid(t_a * ts.reshape(-1, 1) + t_b)
    if no_gate:
        return ff1 + t_interp * ff2
    return ff1 * (1.0 - t_interp) + t_interp * ff2


if __name__ == "__main__":
    # Small config consistent with the CfcCell forward signature.
    batch, input_size, hidden_size, backbone_units = 16, 16, 128, 128

    key = jax.random.PRNGKey(0)
    k_in, k_hx, k_ts, k_p = jax.random.split(key, 4)
    inp = jax.random.normal(k_in, (batch, input_size), jnp.float32)
    hx = 0.1 * jax.random.normal(k_hx, (batch, hidden_size), jnp.float32)
    ts = jax.random.uniform(k_ts, (batch,), jnp.float32, 0.1, 1.0)
    params = make_params(k_p, input_size, hidden_size, backbone_units)

    y = cfc_forward(inp, hx, ts, params, no_gate=False)
    jax.block_until_ready(y)

    ref = cfc_reference(inp, hx, ts, params, hidden_size, no_gate=False)
    assert y.shape == (batch, hidden_size)
    max_diff = float(jnp.max(jnp.abs(y - ref)))
    assert jnp.allclose(y, ref, atol=2e-2, rtol=2e-2), f"mismatch vs reference: {max_diff}"

    print("KERNEL_OK")
</pallas_src>

<mosaic_0001>
module attributes {stable_mosaic.version = 11 : i64} {
  func.func @cfc_kernel(%arg0: i32, %arg1: memref<16x16xbf16, #tpu.memory_space<vmem>>, %arg2: memref<16x128xbf16, #tpu.memory_space<vmem>>, %arg3: memref<16x1xf32, #tpu.memory_space<vmem>>, %arg4: memref<16x128xbf16, #tpu.memory_space<vmem>>, %arg5: memref<128x128xbf16, #tpu.memory_space<vmem>>, %arg6: memref<1x128xf32, #tpu.memory_space<vmem>>, %arg7: memref<128x128xbf16, #tpu.memory_space<vmem>>, %arg8: memref<1x128xf32, #tpu.memory_space<vmem>>, %arg9: memref<128x512xbf16, #tpu.memory_space<vmem>>, %arg10: memref<1x512xf32, #tpu.memory_space<vmem>>, %arg11: memref<16x128xf32, #tpu.memory_space<vmem>>) attributes {dimension_semantics = [#tpu.dimension_semantics<arbitrary>], iteration_bounds = array<i64: 1>, scalar_prefetch = 0 : i64, scratch_operands = 0 : i64, tpu.core_type = #tpu.core_type<tc>, window_params = [{transform_indices = @transform_0, window_bounds = array<i64: 16, 16>}, {transform_indices = @transform_1, window_bounds = array<i64: 16, 128>}, {transform_indices = @transform_2, window_bounds = array<i64: 16, 1>}, {pipeline_mode = #tpu.pipeline_mode<synchronous>, transform_indices = @transform_3, window_bounds = array<i64: 16, 128>}, {pipeline_mode = #tpu.pipeline_mode<synchronous>, transform_indices = @transform_4, window_bounds = array<i64: 128, 128>}, {pipeline_mode = #tpu.pipeline_mode<synchronous>, transform_indices = @transform_5, window_bounds = array<i64: 1, 128>}, {pipeline_mode = #tpu.pipeline_mode<synchronous>, transform_indices = @transform_6, window_bounds = array<i64: 128, 128>}, {pipeline_mode = #tpu.pipeline_mode<synchronous>, transform_indices = @transform_7, window_bounds = array<i64: 1, 128>}, {pipeline_mode = #tpu.pipeline_mode<synchronous>, transform_indices = @transform_8, window_bounds = array<i64: 128, 512>}, {pipeline_mode = #tpu.pipeline_mode<synchronous>, transform_indices = @transform_9, window_bounds = array<i64: 1, 512>}, {transform_indices = @transform_10, window_bounds = array<i64: 16, 128>}]} {
    %c0 = arith.constant 0 : index
    %c0_0 = arith.constant 0 : index
    %0 = vector.load %arg1[%c0, %c0_0] : memref<16x16xbf16, #tpu.memory_space<vmem>>, vector<16x16xbf16>
    %c0_1 = arith.constant 0 : index
    %c0_2 = arith.constant 0 : index
    %1 = vector.load %arg4[%c0_1, %c0_2] : memref<16x128xbf16, #tpu.memory_space<vmem>>, vector<16x128xbf16>
    %cst = arith.constant dense<0.000000e+00> : vector<16x128xf32>
    %2 = tpu.matmul %0, %1, %cst {dimension_numbers = #tpu.dot_dimension_numbers<[1], [0], [0], [1], [0, 0, 1, 1], [], []>} : vector<16x16xbf16>, vector<16x128xbf16>, vector<16x128xf32> -> vector<16x128xf32>
    %c0_3 = arith.constant 0 : index
    %c0_4 = arith.constant 0 : index
    %3 = vector.load %arg2[%c0_3, %c0_4] : memref<16x128xbf16, #tpu.memory_space<vmem>>, vector<16x128xbf16>
    %c0_5 = arith.constant 0 : index
    %c0_6 = arith.constant 0 : index
    %4 = vector.load %arg5[%c0_5, %c0_6] : memref<128x128xbf16, #tpu.memory_space<vmem>>, vector<128x128xbf16>
    %cst_7 = arith.constant dense<0.000000e+00> : vector<16x128xf32>
    %5 = tpu.matmul %3, %4, %cst_7 {dimension_numbers = #tpu.dot_dimension_numbers<[1], [0], [0], [1], [0, 0, 1, 1], [], []>} : vector<16x128xbf16>, vector<128x128xbf16>, vector<16x128xf32> -> vector<16x128xf32>
    %6 = arith.addf %2, %5 : vector<16x128xf32>
    %c0_8 = arith.constant 0 : index
    %c0_9 = arith.constant 0 : index
    %7 = vector.load %arg6[%c0_8, %c0_9] : memref<1x128xf32, #tpu.memory_space<vmem>>, vector<1x128xf32>
    %8 = vector.broadcast %7 : vector<1x128xf32> to vector<16x128xf32>
    %9 = arith.addf %6, %8 : vector<16x128xf32>
    %cst_10 = arith.constant 6.660000e-01 : f32
    %10 = vector.broadcast %cst_10 : f32 to vector<16x128xf32>
    %11 = arith.mulf %10, %9 : vector<16x128xf32>
    %12 = math.tanh %11 : vector<16x128xf32>
    %cst_11 = arith.constant 1.715900e+00 : f32
    %13 = vector.broadcast %cst_11 : f32 to vector<16x128xf32>
    %14 = arith.mulf %13, %12 : vector<16x128xf32>
    %15 = arith.truncf %14 : vector<16x128xf32> to vector<16x128xbf16>
    %c0_12 = arith.constant 0 : index
    %c0_13 = arith.constant 0 : index
    %16 = vector.load %arg7[%c0_12, %c0_13] : memref<128x128xbf16, #tpu.memory_space<vmem>>, vector<128x128xbf16>
    %cst_14 = arith.constant dense<0.000000e+00> : vector<16x128xf32>
    %17 = tpu.matmul %15, %16, %cst_14 {dimension_numbers = #tpu.dot_dimension_numbers<[1], [0], [0], [1], [0, 0, 1, 1], [], []>} : vector<16x128xbf16>, vector<128x128xbf16>, vector<16x128xf32> -> vector<16x128xf32>
    %c0_15 = arith.constant 0 : index
    %c0_16 = arith.constant 0 : index
    %18 = vector.load %arg8[%c0_15, %c0_16] : memref<1x128xf32, #tpu.memory_space<vmem>>, vector<1x128xf32>
    %19 = vector.broadcast %18 : vector<1x128xf32> to vector<16x128xf32>
    %20 = arith.addf %17, %19 : vector<16x128xf32>
    %cst_17 = arith.constant 6.660000e-01 : f32
    %21 = vector.broadcast %cst_17 : f32 to vector<16x128xf32>
    %22 = arith.mulf %21, %20 : vector<16x128xf32>
    %23 = math.tanh %22 : vector<16x128xf32>
    %cst_18 = arith.constant 1.715900e+00 : f32
    %24 = vector.broadcast %cst_18 : f32 to vector<16x128xf32>
    %25 = arith.mulf %24, %23 : vector<16x128xf32>
    %26 = arith.truncf %25 : vector<16x128xf32> to vector<16x128xbf16>
    %c0_19 = arith.constant 0 : index
    %c0_20 = arith.constant 0 : index
    %27 = vector.load %arg9[%c0_19, %c0_20] : memref<128x512xbf16, #tpu.memory_space<vmem>>, vector<128x512xbf16>
    %cst_21 = arith.constant dense<0.000000e+00> : vector<16x512xf32>
    %28 = tpu.matmul %26, %27, %cst_21 {dimension_numbers = #tpu.dot_dimension_numbers<[1], [0], [0], [1], [0, 0, 1, 1], [], []>} : vector<16x128xbf16>, vector<128x512xbf16>, vector<16x512xf32> -> vector<16x512xf32>
    %c0_22 = arith.constant 0 : index
    %c0_23 = arith.constant 0 : index
    %29 = vector.load %arg10[%c0_22, %c0_23] : memref<1x512xf32, #tpu.memory_space<vmem>>, vector<1x512xf32>
    %30 = vector.broadcast %29 : vector<1x512xf32> to vector<16x512xf32>
    %31 = arith.addf %28, %30 : vector<16x512xf32>
    %32 = vector.extract_strided_slice %31 {offsets = [0, 0], sizes = [16, 128], strides = [1, 1]} : vector<16x512xf32> to vector<16x128xf32>
    %33 = math.tanh %32 : vector<16x128xf32>
    %34 = vector.extract_strided_slice %31 {offsets = [0, 128], sizes = [16, 128], strides = [1, 1]} : vector<16x512xf32> to vector<16x128xf32>
    %35 = math.tanh %34 : vector<16x128xf32>
    %36 = vector.extract_strided_slice %31 {offsets = [0, 256], sizes = [16, 128], strides = [1, 1]} : vector<16x512xf32> to vector<16x128xf32>
    %37 = vector.extract_strided_slice %31 {offsets = [0, 384], sizes = [16, 128], strides = [1, 1]} : vector<16x512xf32> to vector<16x128xf32>
    %c0_24 = arith.constant 0 : index
    %c0_25 = arith.constant 0 : index
    %38 = vector.load %arg3[%c0_24, %c0_25] : memref<16x1xf32, #tpu.memory_space<vmem>>, vector<16x1xf32>
    %39 = vector.broadcast %38 : vector<16x1xf32> to vector<16x128xf32>
    %40 = arith.mulf %36, %39 : vector<16x128xf32>
    %41 = arith.addf %40, %37 : vector<16x128xf32>
    %42 = arith.negf %41 : vector<16x128xf32>
    %43 = math.exp %42 : vector<16x128xf32>
    %cst_26 = arith.constant 1.000000e+00 : f32
    %44 = vector.broadcast %cst_26 : f32 to vector<16x128xf32>
    %45 = arith.addf %44, %43 : vector<16x128xf32>
    %46 = arith.divf %44, %45 : vector<16x128xf32>
    %cst_27 = arith.constant 1.000000e+00 : f32
    %47 = vector.broadcast %cst_27 : f32 to vector<16x128xf32>
    %48 = arith.subf %47, %46 : vector<16x128xf32>
    %49 = arith.mulf %33, %48 : vector<16x128xf32>
    %50 = arith.mulf %46, %35 : vector<16x128xf32>
    %51 = arith.addf %49, %50 : vector<16x128xf32>
    %c0_28 = arith.constant 0 : index
    %c0_29 = arith.constant 0 : index
    %52 = vector.load %arg11[%c0_28, %c0_29] : memref<16x128xf32, #tpu.memory_space<vmem>>, vector<16x128xf32>
    tpu.vector_store %arg11[%c0_28, %c0_29], %51 {strides = array<i32>} : memref<16x128xf32, #tpu.memory_space<vmem>>, vector<16x128xf32>,
    return
  }
  func.func @transform_0(%arg0: i32) -> (i32, i32) {
    %c0_i32 = arith.constant 0 : i32
    %c0_i32_0 = arith.constant 0 : i32
    return %arg0, %c0_i32 : i32, i32
  }
  func.func @transform_1(%arg0: i32) -> (i32, i32) {
    %c0_i32 = arith.constant 0 : i32
    %c0_i32_0 = arith.constant 0 : i32
    return %arg0, %c0_i32 : i32, i32
  }
  func.func @transform_2(%arg0: i32) -> (i32, i32) {
    %c0_i32 = arith.constant 0 : i32
    %c0_i32_0 = arith.constant 0 : i32
    return %arg0, %c0_i32 : i32, i32
  }
  func.func @transform_3(%arg0: i32) -> (i32, i32) {
    %c0_i32 = arith.constant 0 : i32
    %c0_i32_0 = arith.constant 0 : i32
    %c0_i32_1 = arith.constant 0 : i32
    return %c0_i32, %c0_i32_0 : i32, i32
  }
  func.func @transform_4(%arg0: i32) -> (i32, i32) {
    %c0_i32 = arith.constant 0 : i32
    %c0_i32_0 = arith.constant 0 : i32
    %c0_i32_1 = arith.constant 0 : i32
    return %c0_i32, %c0_i32_0 : i32, i32
  }
  func.func @transform_5(%arg0: i32) -> (i32, i32) {
    %c0_i32 = arith.constant 0 : i32
    %c0_i32_0 = arith.constant 0 : i32
    %c0_i32_1 = arith.constant 0 : i32
    return %c0_i32, %c0_i32_0 : i32, i32
  }
  func.func @transform_6(%arg0: i32) -> (i32, i32) {
    %c0_i32 = arith.constant 0 : i32
    %c0_i32_0 = arith.constant 0 : i32
    %c0_i32_1 = arith.constant 0 : i32
    return %c0_i32, %c0_i32_0 : i32, i32
  }
  func.func @transform_7(%arg0: i32) -> (i32, i32) {
    %c0_i32 = arith.constant 0 : i32
    %c0_i32_0 = arith.constant 0 : i32
    %c0_i32_1 = arith.constant 0 : i32
    return %c0_i32, %c0_i32_0 : i32, i32
  }
  func.func @transform_8(%arg0: i32) -> (i32, i32) {
    %c0_i32 = arith.constant 0 : i32
    %c0_i32_0 = arith.constant 0 : i32
    %c0_i32_1 = arith.constant 0 : i32
    return %c0_i32, %c0_i32_0 : i32, i32
  }
  func.func @transform_9(%arg0: i32) -> (i32, i32) {
    %c0_i32 = arith.constant 0 : i32
    %c0_i32_0 = arith.constant 0 : i32
    %c0_i32_1 = arith.constant 0 : i32
    return %c0_i32, %c0_i32_0 : i32, i32
  }
  func.func @transform_10(%arg0: i32) -> (i32, i32) {
    %c0_i32 = arith.constant 0 : i32
    %c0_i32_0 = arith.constant 0 : i32
    return %arg0, %c0_i32 : i32, i32
  }
}

</mosaic_0001>

<bundles_post_ra>
// kernel: tpu_custom_call.1
= control target key start
LH: loop header
LB: loop body
LE: loop exit
PB: predicated region body
PF: predicated region fallthrough
CT: control target
= control target key end

     0   :  { %15 = vsyncpa [#allocation3], 0  ;;  %s1217_s0 = inlined_call_operand.vmem [shape: bf16[16,16], index: 0, kind: input, shape index: {}]   ;;  %s1218_s1 = inlined_call_operand.vmem [shape: bf16[16,128], index: 1, kind: input, shape index: {}]   ;;  %s1219_s2 = inlined_call_operand.vmem [shape: f32[16,1], index: 2, kind: input, shape index: {}]   ;;  %s1220_s3 = inlined_call_operand.vmem [shape: bf16[16,128], index: 3, kind: input, shape index: {}]   ;;  %s1221_s4 = inlined_call_operand.hbm [shape: bf16[128,128], index: 4, kind: input, shape index: {}]   ;;  %s1222_s5 = inlined_call_operand.vmem [shape: f32[1,128], index: 5, kind: input, shape index: {}]   ;;  %s1223_s6 = inlined_call_operand.hbm [shape: bf16[128,128], index: 6, kind: input, shape index: {}]   ;;  %s1224_s7 = inlined_call_operand.vmem [shape: f32[1,128], index: 7, kind: input, shape index: {}]   ;;  %s1225_s8 = inlined_call_operand.hbm [shape: bf16[128,512], index: 8, kind: input, shape index: {}]   ;;  %s1226_s9 = inlined_call_operand.vmem [shape: f32[1,512], index: 9, kind: input, shape index: {}]   ;;  %s1227_s10 = inlined_call_operand.hbm [shape: f32[16,128], index: 10, kind: output, shape index: {}]  }
   0x1   :  { %16 = vsyncpa [#allocation6], 0 }
   0x2   :  { %17 = vsyncpa [#allocation4], 0  ;;  %s1067_s13 = smov [#allocation5]   ;;  %s1068_s15 = smov [#allocation2]  }
   0x3   :  { %s45_s14 = sshll.u32 %s1067_s13, 4  ;;  %s31_s16 = sshll.u32 %s1068_s15, 4  ;;  %s46_s14 = int_to_ptr.vmem [resolvable:$true] %s45_s14  ;;  %s1135_s16 = int_to_ptr.vmem [resolvable:$true] %s31_s16 }
   0x4   :  { %s973_s19 = scalar_lea.hbm %s1223_s6, 1024 }
   0x5   :  { %p974_p0 = scmp.ne.s32.totalorder %s1223_s6, %s973_s19  ;;  %p977_p1 = scmp.lt.u32.totalorder %s973_s19, %s1223_s6 }
   0x7   :  { %p979_p2 = pnand %p977_p1, %p974_p0 }
   0x9   :  { %982 = shalt.err (!%p979_p2)
}
   0xa   :  { %s983_s24 = scalar_lea.vmem %s46_s14, 1024  ;;  %p988_p4 = scmp.lt.s32.totalorder %s46_s14, %s46_s14 }
   0xb   :  { %p984_p3 = scmp.ne.s32.totalorder %s46_s14, %s983_s24  ;;  %p989_p5 = scmp.lt.s32.totalorder %s983_s24, %s983_s24 }
   0xd   :  { %p990_p6 = por %p989_p5, %p988_p4 }
   0xf   :  { %p991_p7 = pnand %p990_p6, %p984_p3 }
  0x11   :  { %994 = shalt.err (!%p991_p7)
}
  0x12   :  { %s1069_s25 = smov 64   ;;  %s1070_s26 = smov 4  }
  0x13   :  { %51 = dma.hbm_to_vmem [thread:$0]  %s1223_s6, 1024, %s46_s14, [#allocation6], %s1069_s25, %s1069_s25, %s1070_s26  }
  0x14   :  { %s995_s11 = scalar_lea.hbm %s1221_s4, 1024 }
  0x15   :  { %p996_p8 = scmp.ne.s32.totalorder %s1221_s4, %s995_s11  ;;  %p999_p9 = scmp.lt.u32.totalorder %s995_s11, %s1221_s4 }
  0x17   :  { %p1001_p10 = pnand %p999_p9, %p996_p8 }
  0x19   :  { %1004 = shalt.err (!%p1001_p10)
}
  0x1a   :  { %s1005_s18 = scalar_lea.vmem %s1135_s16, 1024  ;;  %p1010_p12 = scmp.lt.s32.totalorder %s1135_s16, %s1135_s16 }
  0x1b   :  { %p1006_p11 = scmp.ne.s32.totalorder %s1135_s16, %s1005_s18  ;;  %p1011_p13 = scmp.lt.s32.totalorder %s1005_s18, %s1005_s18 }
  0x1d   :  { %p1012_p0 = por %p1011_p13, %p1010_p12 }
  0x1f   :  { %p1013_p1 = pnand %p1012_p0, %p1006_p11 }
  0x21   :  { %1016 = shalt.err (!%p1013_p1)
}
  0x22   :  { %37 = dma.hbm_to_vmem [thread:$0]  %s1221_s4, 1024, %s1135_s16, [#allocation3], %s1069_s25, %s1069_s25, %s1070_s26  }
  0x23   :  { %s1071_s19 = smov [#allocation7]   ;;  %s1017_s23 = scalar_lea.hbm %s1225_s8, 4096 }
  0x24   :  { %s59_s20 = sshll.u32 %s1071_s19, 4  ;;  %p1018_p2 = scmp.ne.s32.totalorder %s1225_s8, %s1017_s23  ;;  %s60_s20 = int_to_ptr.vmem [resolvable:$true] %s59_s20 }
  0x25   :  { %p1021_p3 = scmp.lt.u32.totalorder %s1017_s23, %s1225_s8 }
  0x27   :  { %p1023_p4 = pnand %p1021_p3, %p1018_p2 }
  0x29   :  { %1026 = shalt.err (!%p1023_p4)
}
  0x2a   :  { %s1027_s30 = scalar_lea.vmem %s60_s20, 4096  ;;  %p1032_p6 = scmp.lt.s32.totalorder %s60_s20, %s60_s20 }
  0x2b   :  { %p1028_p5 = scmp.ne.s32.totalorder %s60_s20, %s1027_s30  ;;  %p1033_p7 = scmp.lt.s32.totalorder %s1027_s30, %s1027_s30 }
  0x2d   :  { %p1034_p8 = por %p1033_p7, %p1032_p6 }
  0x2f   :  { %p1035_p9 = pnand %p1034_p8, %p1028_p5 }
  0x31   :  { %1038 = shalt.err (!%p1035_p9)
}
  0x32   :  { %s1072_s4 = smov 256   ;;  %s1073_s16 = smov 16  }
  0x33   :  { %65 = dma.hbm_to_vmem [thread:$0]  %s1225_s8, 4096, %s60_s20, [#allocation6], %s1072_s4, %s1072_s4, %s1073_s16  }
  0x34   :  { %1061 = dma.done.wait [#allocation3], 1024  }
  0x35   :  { %1062 = vsyncadd [#allocation3], 4294966272 }
  0x36   :  { %1063 = dma.done.wait [#allocation6], 5120  }
  0x37   :  { %1064 = vsyncadd [#allocation6], 4294962176  ;;  %v1074_v0 = vmov 0.0   ;;  %vm1075_vm0 = vmmov 0   ;;  %v882_v1 = vld [vmem:[#allocation2] sm:$0xff]   ;;  %v883_v2 = vld [vmem:[#allocation2 + $0x8] sm:$0xff]  }
  0x38   :  { %822 = vmatprep.subr.bf16.mxu0 %v1074_v0  ;;  %842 = vmatprep.subr.bf16.mxu1 %v1074_v0  ;;  %v884_v3 = vld [vmem:[#allocation2 + $0x10] sm:$0xff]   ;;  %v889_v4 = vld [vmem:[%s1220_s3] sm:$0xff]   ;;  %vm206_vm1 = vcmask 130048   ;;  %v885_v6 = vld [vmem:[#allocation2 + $0x18] sm:$0xff]  }
  0x39   :  { %844 = vmatprep.mubr.msk.bf16.mxu1 %vm1075_vm0, %v1074_v0  ;;  %838 = vmatprep.mubr.msk.bf16.mxu0 %vm1075_vm0, %v1074_v0  ;;  %v891_v5 = vld [vmem:[%s1217_s0] sm:$0xff]   ;;  %v887_v9 = vld [vmem:[#allocation2 + $0x28] sm:$0xff]   ;;  %v888_v10 = vld [vmem:[#allocation2 + $0x30] sm:$0xff]  }
  0x3a   :  { %823 = vmatpush3.bf16.msra.mxu0 %v882_v1  ;;  %843 = vmatpush3.bf16.msra.mxu1 %v889_v4  ;;  %v893_v7 = vld [vmem:[#allocation5] sm:$0xff]   ;;  %v890_v11 = vld [vmem:[#allocation2 + $0x38] sm:$0xff]   ;;  %v894_v13 = vld [vmem:[#allocation5 + $0x8] sm:$0xff]  }
  0x3b   :  { %824 = vmatprep.subr.bf16.mxu0 %v1074_v0  ;;  %848 = vmatprep.subr.bf16.mxu1 %v1074_v0  ;;  %v886_v8 = vld [vmem:[#allocation2 + $0x20] sm:$0xff]   ;;  %v895_v14 = vld [vmem:[#allocation5 + $0x10] sm:$0xff]   ;;  %v896_v15 = vld [vmem:[#allocation5 + $0x18] sm:$0xff]  }
  0x3c   :  { %v892_v12 = vld [vmem:[%s1218_s1] sm:$0xff]   ;;  %v898_v17 = vld [vmem:[#allocation5 + $0x28] sm:$0xff]   ;;  %v899_v18 = vld [vmem:[#allocation5 + $0x30] sm:$0xff]  }
  0x3d   :  { %845 = vmatmul.mubr.msk.bf16.vlgmr.msra.gmra.mrb[0].mxu1 %vm206_vm1, %v891_v5  ;;  %v897_v16 = vld [vmem:[#allocation5 + $0x20] sm:$0xff]   ;;  %v900_v19 = vld [vmem:[#allocation5 + $0x38] sm:$0xff]  }
  0x3e   :  { %825 = vmatpush3.bf16.msra.mxu0 %v883_v2  ;;  %849 = vmatpush3.bf16.msra.mxu1 %v893_v7  ;;  %v901_v20 = vld [vmem:[#allocation7] ss:$16 sps:$4 sm:$0xff]   ;;  %v903_v21 = vld [vmem:[#allocation7 + $0x4] ss:$16 sps:$4 sm:$0xff]   ;;  %v906_v22 = vld [vmem:[#allocation7 + $0xc] ss:$16 sps:$4 sm:$0xff]  }
  0x3f   :  { %826 = vmatprep.subr.bf16.mxu0 %v1074_v0  ;;  %864 = vmatprep.mubr.msk.bf16.mxu1 %vm1075_vm0, %v1074_v0  ;;  %v909_v23 = vld [vmem:[#allocation7 + $0x24] ss:$16 sps:$4 sm:$0xff]   ;;  %v907_v24 = vld [vmem:[#allocation7 + $0x20] ss:$16 sps:$4 sm:$0xff]   ;;  %v904_v46 = vld [vmem:[#allocation7 + $0x8] ss:$16 sps:$4 sm:$0xff]  }
  0x40   :  { %850 = vmatprep.subr.bf16.mxu1 %v1074_v0  ;;  %v915_v25 = vld [vmem:[#allocation7 + $0x44] ss:$16 sps:$4 sm:$0xff]   ;;  %v913_v26 = vld [vmem:[#allocation7 + $0x40] ss:$16 sps:$4 sm:$0xff]   ;;  %v912_v48 = vld [vmem:[#allocation7 + $0x2c] ss:$16 sps:$4 sm:$0xff]  }
  0x41   :  { %v758_v32 = vld [vmem:[%s1222_s5] ss:$0 sm:$0xff]  ;;  %v910_v49 = vld [vmem:[#allocation7 + $0x28] ss:$16 sps:$4 sm:$0xff]   ;;  %v918_v50 = vld [vmem:[#allocation7 + $0x4c] ss:$16 sps:$4 sm:$0xff]  }
  0x42   :  { %827 = vmatpush3.bf16.msra.mxu0 %v884_v3  ;;  %851 = vmatpush3.bf16.msra.mxu1 %v894_v13  ;;  %v916_v51 = vld [vmem:[#allocation7 + $0x48] ss:$16 sps:$4 sm:$0xff]   ;;  %v921_v52 = vld [vmem:[#allocation7 + $0x64] ss:$16 sps:$4 sm:$0xff]   ;;  %v924_v53 = vld [vmem:[#allocation7 + $0x6c] ss:$16 sps:$4 sm:$0xff]  }
  0x43   :  { %828 = vmatprep.subr.bf16.mxu0 %v1074_v0  ;;  %852 = vmatprep.subr.bf16.mxu1 %v1074_v0  ;;  %v919_v54 = vld [vmem:[#allocation7 + $0x60] ss:$16 sps:$4 sm:$0xff]   ;;  %v922_v55 = vld [vmem:[#allocation7 + $0x68] ss:$16 sps:$4 sm:$0xff]   ;;  %v927_v56 = vld [vmem:[#allocation7 + $0x84] ss:$16 sps:$4 sm:$0xff]  }
  0x44   :  { %v930_v57 = vld [vmem:[#allocation7 + $0x8c] ss:$16 sps:$4 sm:$0xff]   ;;  %v925_v58 = vld [vmem:[#allocation7 + $0x80] ss:$16 sps:$4 sm:$0xff]   ;;  %v928_v59 = vld [vmem:[#allocation7 + $0x88] ss:$16 sps:$4 sm:$0xff]  }
  0x45   :  { %v933_v60 = vld [vmem:[#allocation7 + $0xa4] ss:$16 sps:$4 sm:$0xff]   ;;  %v936_v61 = vld [vmem:[#allocation7 + $0xac] ss:$16 sps:$4 sm:$0xff]   ;;  %v931_v62 = vld [vmem:[#allocation7 + $0xa0] ss:$16 sps:$4 sm:$0xff]  }
  0x46   :  { %829 = vmatpush3.bf16.msra.mxu0 %v885_v6  ;;  %853 = vmatpush3.bf16.msra.mxu1 %v895_v14  ;;  %v934_v63 = vld [vmem:[#allocation7 + $0xa8] ss:$16 sps:$4 sm:$0xff]   ;;  %v942_v1 = vld [vmem:[#allocation7 + $0xcc] ss:$16 sps:$4 sm:$0xff]   ;;  %v937_v2 = vld [vmem:[#allocation7 + $0xc0] ss:$16 sps:$4 sm:$0xff]  }
  0x47   :  { %830 = vmatprep.subr.bf16.mxu0 %v1074_v0  ;;  %854 = vmatprep.subr.bf16.mxu1 %v1074_v0  ;;  %v940_v3 = vld [vmem:[#allocation7 + $0xc8] ss:$16 sps:$4 sm:$0xff]   ;;  %v945_v4 = vld [vmem:[#allocation7 + $0xe4] ss:$16 sps:$4 sm:$0xff]   ;;  %v948_v5 = vld [vmem:[#allocation7 + $0xec] ss:$16 sps:$4 sm:$0xff]  }
  0x48   :  { %v943_v6 = vld [vmem:[#allocation7 + $0xe0] ss:$16 sps:$4 sm:$0xff]   ;;  %v946_v7 = vld [vmem:[#allocation7 + $0xe8] ss:$16 sps:$4 sm:$0xff]  }
  0x4a   :  { %831 = vmatpush3.bf16.msra.mxu0 %v886_v8  ;;  %855 = vmatpush3.bf16.msra.mxu1 %v896_v15  ;;  %v1076_v8 = vmov 0  }
  0x4b   :  { %832 = vmatprep.subr.bf16.mxu0 %v1074_v0  ;;  %856 = vmatprep.subr.bf16.mxu1 %v1074_v0 }
  0x4c   :  { %881 = vset.pattern.permute.xlu0 %v1076_v8 }
  0x4e   :  { %833 = vmatpush3.bf16.msra.mxu0 %v887_v9  ;;  %857 = vmatpush3.bf16.msra.mxu1 %v897_v16  ;;  %v690_v9 = vld [vmem:[%s1219_s2] sm:$0xff] }
  0x4f   :  { %834 = vmatprep.subr.bf16.mxu0 %v1074_v0  ;;  %858 = vmatprep.subr.bf16.mxu1 %v1074_v0 }
  0x50   :  { %694 = vperm.xlu0 %881, %v690_v9  }
  0x52   :  { %835 = vmatpush3.bf16.msra.mxu0 %v888_v10  ;;  %859 = vmatpush3.bf16.msra.mxu1 %v898_v17  ;;  %v691_v10 = vld [vmem:[%s1219_s2 + $0x8] sm:$0xff] }
  0x53   :  { %836 = vmatprep.subr.bf16.mxu0 %v1074_v0  ;;  %860 = vmatprep.subr.bf16.mxu1 %v1074_v0 }
  0x54   :  { %699 = vperm.xlu0 %881, %v691_v10  }
  0x56   :  { %837 = vmatpush3.bf16.msra.mxu0 %v890_v11  ;;  %861 = vmatpush3.bf16.msra.mxu1 %v899_v18  ;;  %v759_v11 = vld [vmem:[%s1224_s7] ss:$0 sm:$0xff] }
  0x57   :  { %862 = vmatprep.subr.bf16.mxu1 %v1074_v0  ;;  %600 = vmatprep.subr.bf16.mxu0 %v903_v21  ;;  %v939_v0 = vld [vmem:[#allocation7 + $0xc4] ss:$16 sps:$4 sm:$0xff]  }
  0x59   :  { %839 = vmatmul.mubr.bf16.vlgmr.msra.gmra.mrb[0].mxu0 %v892_v12 }
  0x5a   :  { %863 = vmatpush3.bf16.msra.mxu1 %v900_v19  ;;  %601 = vmatpush1.bf16.msra.mxu0 %v901_v20 }
  0x5b   :  { %643 = vmatprep.subr.bf16.mxu1 %v906_v22  ;;  %602 = vmatprep.subr.bf16.mxu0 %v909_v23 }
  0x5c   :  { %632 = vmatprep.mubr.bf16.mxu0 %v1076_v8 }
  0x5e   :  { %603 = vmatpush1.bf16.msra.mxu0 %v907_v24 }
  0x5f   :  { %604 = vmatprep.subr.bf16.mxu0 %v915_v25  ;;  %v420_v25 = vlaneseq }
  0x62   :  { %605 = vmatpush1.bf16.msra.mxu0 %v913_v26  ;;  %v421_v26 = vshrl.u32 %v420_v25, 7 }
  0x63   :  { %606 = vmatprep.subr.bf16.mxu0 %v921_v52 }
  0x64   :  { %v426_v52 = vsub.s32 1, %v421_v26 }
  0x66   :  { %607 = vmatpush1.bf16.msra.mxu0 %v919_v54 }
  0x67   :  { %608 = vmatprep.subr.bf16.mxu0 %v927_v56 }
  0x6a   :  { %609 = vmatpush1.bf16.msra.mxu0 %v925_v58 }
  0x6b   :  { %610 = vmatprep.subr.bf16.mxu0 %v933_v60 }
  0x6e   :  { %611 = vmatpush1.bf16.msra.mxu0 %v931_v62 }
  0x6f   :  { %612 = vmatprep.subr.bf16.mxu0 %v939_v0 }
  0x72   :  { %613 = vmatpush1.bf16.msra.mxu0 %v937_v2 }
  0x73   :  { %614 = vmatprep.subr.bf16.mxu0 %v945_v4 }
  0x76   :  { %615 = vmatpush1.bf16.msra.mxu0 %v943_v6 }
 0x110   :  { %v244_v27 = vpop.f32.mrb[0].mxu1 }
 0x111   :  { %v846_v28 = vpop.f32.mrb[1].mxu1 }
 0x112   :  { %v247_v29 = vpop.f32.mrb[2].mxu1  ;;  %v418_v28 = vld [vmem:[%s1226_s9] sm:$0xf]  ;;  %s1077_s9 = smov [#allocation8]  }
 0x113   :  { %v847_v30 = vpop.f32.mrb[3].mxu1  ;;  %s733_s20 = sshll.u32 %s1077_s9, 4  ;;  %s734_s20 = int_to_ptr.vmem [resolvable:$true] %s733_s20 }
 0x114   :  { %s1039_s21 = scalar_lea.vmem %s734_s20, 256  ;;  %p1044_p11 = scmp.lt.s32.totalorder %s734_s20, %s734_s20 }
 0x115   :  { %p1040_p10 = scmp.ne.s32.totalorder %s734_s20, %s1039_s21  ;;  %p1045_p12 = scmp.lt.s32.totalorder %s1039_s21, %s1039_s21 }
 0x117   :  { %p1046_p13 = por %p1045_p12, %p1044_p11 }
 0x119   :  { %p1047_p0 = pnand %p1046_p13, %p1040_p10 }
 0x12c   :  { %v188_v31 = vpop.f32.mrb[0].mxu0 }
 0x12d   :  { %v245_v33 = vadd.f32 %v244_v27, %v188_v31  ;;  %v840_v34 = vpop.f32.mrb[1].mxu0  ;;  %v430_v27 = vsub.s32 2, %v421_v26  ;;  %v695_v31 = vpop.permute.xlu0 %694 }
 0x12e   :  { %v191_v35 = vpop.f32.mrb[2].mxu0 }
 0x12f   :  { %v258_v36 = vadd.f32 %v758_v32, %v245_v33  ;;  %v248_v37 = vadd.f32 %v247_v29, %v191_v35  ;;  %v841_v38 = vpop.f32.mrb[3].mxu0  ;;  %v434_v29 = vsub.s32 3, %v421_v26  ;;  %v431_v30 = vrot.slane %v418_v28, %v430_v27 }
 0x131   :  { %v260_v39 = vmul.f32 0.666, %v258_v36  ;;  %v259_v40 = vadd.f32 %v758_v32, %v248_v37  ;;  %v435_v32 = vrot.slane %v418_v28, %v434_v29 }
 0x133   :  { %949 = vtanh.f32 %v260_v39  ;;  %v261_v41 = vmul.f32 0.666, %v259_v40 }
 0x135   :  { %951 = vtanh.f32 %v261_v41 }
 0x13d   :  { %v950_v42 = vpop.eup %949 }
 0x13e   :  { %v264_v44 = vmul.f32 1.7159, %v950_v42 }
 0x13f   :  { %v952_v43 = vpop.eup %951 }
 0x140   :  { %v265_v45 = vmul.f32 1.7159, %v952_v43 }
 0x142   :  { %v266_v47 = vpack.c.bf16 %v265_v45, %v264_v44  ;;  %v700_v45 = vpop.permute.xlu0 %699 }
 0x144   :  { %865 = vmatmul.mubr.bf16.vlgmr.msra.gmra.mrb[4].mxu1 %v266_v47 }
 0x145   :  { %644 = vmatpush1.bf16.msra.mxu1 %v904_v46  ;;  %675 = vmatprep.mubr.bf16.mxu1 %v1076_v8 }
 0x146   :  { %645 = vmatprep.subr.bf16.mxu1 %v912_v48 }
 0x149   :  { %646 = vmatpush1.bf16.msra.mxu1 %v910_v49 }
 0x14a   :  { %647 = vmatprep.subr.bf16.mxu1 %v918_v50 }
 0x14d   :  { %648 = vmatpush1.bf16.msra.mxu1 %v916_v51  ;;  %v422_v51 = vsub.s32 0, %v421_v26 }
 0x14e   :  { %649 = vmatprep.subr.bf16.mxu1 %v924_v53 }
 0x14f   :  { %v423_v54 = vrot.slane %v418_v28, %v422_v51 }
 0x151   :  { %650 = vmatpush1.bf16.msra.mxu1 %v922_v55  ;;  %v427_v55 = vrot.slane %v418_v28, %v426_v52 }
 0x152   :  { %651 = vmatprep.subr.bf16.mxu1 %v930_v57 }
 0x155   :  { %652 = vmatpush1.bf16.msra.mxu1 %v928_v59 }
 0x156   :  { %653 = vmatprep.subr.bf16.mxu1 %v936_v61 }
 0x159   :  { %654 = vmatpush1.bf16.msra.mxu1 %v934_v63 }
 0x15a   :  { %655 = vmatprep.subr.bf16.mxu1 %v942_v1 }
 0x15d   :  { %656 = vmatpush1.bf16.msra.mxu1 %v940_v3 }
 0x15e   :  { %657 = vmatprep.subr.bf16.mxu1 %v948_v5 }
 0x161   :  { %658 = vmatpush1.bf16.msra.mxu1 %v946_v7 }
 0x217   :  { %v372_v12 = vpop.f32.mrb[4].mxu1 }
 0x218   :  { %v373_v13 = vadd.f32 %v759_v11, %v372_v12  ;;  %v866_v14 = vpop.f32.mrb[5].mxu1 }
 0x219   :  { %v375_v15 = vpop.f32.mrb[6].mxu1 }
 0x21a   :  { %v379_v16 = vmul.f32 0.666, %v373_v13  ;;  %v376_v17 = vadd.f32 %v759_v11, %v375_v15  ;;  %v867_v18 = vpop.f32.mrb[7].mxu1 }
 0x21c   :  { %953 = vtanh.f32 %v379_v16  ;;  %v380_v19 = vmul.f32 0.666, %v376_v17 }
 0x21e   :  { %955 = vtanh.f32 %v380_v19 }
 0x226   :  { %v954_v20 = vpop.eup %953 }
 0x227   :  { %v383_v22 = vmul.f32 1.7159, %v954_v20 }
 0x228   :  { %v956_v21 = vpop.eup %955 }
 0x229   :  { %v384_v23 = vmul.f32 1.7159, %v956_v21 }
 0x22b   :  { %v385_v24 = vpack.c.bf16 %v384_v23, %v383_v22 }
 0x22d   :  { %633 = vmatmul.mubr.bf16.vlgmr.msra.gmra.mrb[4].mxu0 %v385_v24  ;;  %676 = vmatmul.mubr.bf16.vlgmr.msra.gmra.mrb[8].mxu1 %v385_v24 }
 0x300   :  { %v634_v33 = vpop.f32.mrb[4].mxu0  ;;  %v677_v34 = vpop.f32.mrb[8].mxu1 }
 0x301   :  { %v678_v35 = vadd.f32 %v677_v34, %v431_v30  ;;  %v636_v36 = vpop.f32.mrb[5].mxu0  ;;  %v679_v37 = vpop.f32.mrb[9].mxu1  ;;  %v635_v56 = vadd.f32 %v634_v33, %v423_v54 }
 0x302   :  { %v680_v38 = vadd.f32 %v679_v37, %v435_v32  ;;  %v638_v39 = vpop.f32.mrb[6].mxu0  ;;  %v681_v40 = vpop.f32.mrb[10].mxu1  ;;  %v637_v57 = vadd.f32 %v636_v36, %v427_v55 }
 0x303   :  { %v702_v41 = vmul.f32 %v695_v31, %v678_v35  ;;  %v682_v42 = vadd.f32 %v681_v40, %v431_v30  ;;  %v640_v43 = vpop.f32.mrb[7].mxu0  ;;  %v683_v44 = vpop.f32.mrb[11].mxu1  ;;  %v639_v62 = vadd.f32 %v638_v39, %v423_v54 }
 0x304   :  { %v684_v46 = vadd.f32 %v683_v44, %v435_v32  ;;  %v641_v59 = vadd.f32 %v640_v43, %v427_v55 }
 0x305   :  { %v704_v47 = vadd.f32 %v702_v41, %v680_v38  ;;  %v703_v48 = vmul.f32 %v700_v45, %v682_v42 }
 0x307   :  { %v800_v49 = vmul.f32 -1.442695, %v704_v47  ;;  %v705_v50 = vadd.f32 %v703_v48, %v684_v46 }
 0x309   :  { %957 = vpow2.f32 %v800_v49  ;;  %v801_v53 = vmul.f32 -1.442695, %v705_v50 }
 0x30b   :  { %959 = vpow2.f32 %v801_v53 }
 0x30c   :  { %961 = vtanh.f32 %v635_v56 }
 0x30d   :  { %963 = vtanh.f32 %v637_v57 }
 0x313   :  { %v958_v58 = vpop.eup %957 }
 0x314   :  { %v712_v60 = vadd.f32 1.0, %v958_v58 }
 0x315   :  { %v960_v61 = vpop.eup %959 }
 0x316   :  { %965 = vrcp.f32 %v712_v60  ;;  %v713_v63 = vadd.f32 1.0, %v960_v61  ;;  %v962_v0 = vpop.eup %961 }
 0x317   :  { %967 = vtanh.f32 %v641_v59  ;;  %v964_v1 = vpop.eup %963 }
 0x318   :  { %969 = vrcp.f32 %v713_v63 }
 0x319   :  { %971 = vtanh.f32 %v639_v62 }
 0x320   :  { %v966_v2 = vpop.eup %965 }
 0x321   :  { %v968_v3 = vpop.eup %967  ;;  %v718_v4 = vsub.f32 1.0, %v966_v2  ;;  %v722_v5 = vmul.f32 %v966_v2, %v964_v1 }
 0x322   :  { %v970_v6 = vpop.eup %969 }
 0x323   :  { %v719_v7 = vsub.f32 1.0, %v970_v6  ;;  %v720_v8 = vmul.f32 %v962_v0, %v718_v4  ;;  %v723_v9 = vmul.f32 %v970_v6, %v968_v3  ;;  %v972_v10 = vpop.eup %971 }
 0x325   :  { %v721_v11 = vmul.f32 %v972_v10, %v719_v7  ;;  %v724_v12 = vadd.f32 %v722_v5, %v720_v8 }
 0x327   :  { %v725_v13 = vadd.f32 %v723_v9, %v721_v11  ;;  %726 = vst [vmem:[#allocation8] sm:$0xff] %v724_v12 }
 0x329   :  { %727 = vst [vmem:[#allocation8 + $0x8] sm:$0xff] %v725_v13 }
 0x32a   :  { %1050 = shalt.err (!%p1047_p0)
}
 0x32b   :  { %s1051_s24 = scalar_lea.hbm %s1227_s10, 256 }
 0x32c   :  { %p1052_p1 = scmp.ne.s32.totalorder %s1227_s10, %s1051_s24  ;;  %p1055_p2 = scmp.lt.u32.totalorder %s1051_s24, %s1227_s10 }
 0x32e   :  { %p1057_p3 = pnand %p1055_p2, %p1052_p1 }
 0x330   :  { %1060 = shalt.err (!%p1057_p3)
}
 0x331   :  { %s1078_s4 = smov 128   ;;  %s1079_s16 = smov 8  }
 0x332   :  { %739 = dma.vmem_to_hbm [thread:$0]  %s734_s20, 256, %s1227_s10, [#allocation4], %s1078_s4, %s1078_s4, %s1079_s16  }
 0x333   :  { %1065 = dma.done.wait [#allocation4], 256  }
 0x334   :  { %1066 = vsyncadd [#allocation4], 4294967040 }
 0x335   :  { %743 = vsyncpa [#allocation3], 1 }
 0x336   :  { %744 = vsyncpa [#allocation6], 1 }
 0x337   :  { %745 = vsyncpa [#allocation4], 1 }

</bundles_post_ra>
